<compile_context>
chip_gen: v7x
topology: tpu7x:2x2x1
jax: 0.10.0
libtpu: 0.0.40
codegen_flags: <defaults>
</compile_context>

<pallas_src>
import functools
import math

import jax
import jax.numpy as jnp
from jax.experimental import pallas as pl
from jax.experimental.pallas import tpu as pltpu


# ---------------------------------------------------------------------------
# Roll-direction probe (run once, cached): we need "bring lane l+k down to l".
# ---------------------------------------------------------------------------
@functools.lru_cache(maxsize=None)
def _roll_is_numpy_convention():
    """True if pltpu.roll(x, s, axis) == np.roll(x, s, axis) on this backend."""
    def probe(x_ref, o_ref):
        o_ref[...] = pltpu.roll(x_ref[...], 127, axis=1)

    with jax.ensure_compile_time_eval():
        x = jax.lax.broadcasted_iota(jnp.float32, (8, 128), 1)
        y = pl.pallas_call(
            probe, out_shape=jax.ShapeDtypeStruct((8, 128), jnp.float32)
        )(x)
        v = float(y[0, 0])
    if abs(v - 1.0) < 0.5:      # out[l] = x[(l - 127) % 128] = x[l + 1]  (numpy)
        return True
    if abs(v - 127.0) < 0.5:    # out[l] = x[(l + 127) % 128] = x[l - 1]
        return False
    raise RuntimeError(f"Unexpected pltpu.roll semantics (probe value {v})")


def _resolve_down_shifts():
    """Return (s1, s2): roll shifts giving out[:, l] = x[:, l + 1] / l + 2."""
    if _roll_is_numpy_convention():
        return 127, 126
    return 1, 2


# ---------------------------------------------------------------------------
# Kernel
# ---------------------------------------------------------------------------
def _giou_kernel(p_ref, t_ref, o_ref, *, eps, r_tile, chunk_rows, num_blocks,
                 rows_last, s1, s2):
    # p_ref / t_ref: (r_tile, 128) interleaved rows; each 4-lane group holds
    # one box as [x1, y1, x2, y2].  o_ref: (1, 8, 128) per-block partial sums.
    nchunks = r_tile // chunk_rows

    def down(v, s):  # out[:, l] = v[:, l + k], with s the resolved shift for k
        return pltpu.roll(v, s, axis=1)

    def chunk_partial(row0, masked):
        p = p_ref[pl.ds(row0, chunk_rows), :].astype(jnp.float32)
        t = t_ref[pl.ds(row0, chunk_rows), :].astype(jnp.float32)

        # TODO(synk): the PyTorch reference asserts x2 >= x1 / y2 >= y1 at
        # runtime; runtime asserts are not expressed inside the kernel.

        c_lo = jnp.minimum(p, t)   # per group: [xc1, yc1, xkis2, ykis2]
        c_hi = jnp.maximum(p, t)   # per group: [xkis1, ykis1, xc2, yc2]

        # Intersection: width at lane offset 0, height at offset 1.
        di = down(c_lo, s2) - c_hi
        ri = jnp.maximum(di, 0.0)                 # relu == masked positive-overlap
        inter = ri * down(ri, s1)

        # Box areas (pred / target), enclosing box area.
        dp = down(p, s2) - p
        area_p = dp * down(dp, s1)
        dt = down(t, s2) - t
        area_t = dt * down(dt, s1)
        dc = down(c_hi, s2) - c_lo
        area_c = dc * down(dc, s1)

        union = area_p + area_t - inter
        iou = inter / (union + eps)
        giou = iou - (area_c - union) / (area_c + eps)
        loss = 1.0 - giou          # valid per-box loss sits at lanes l % 4 == 0

        if masked:
            # Only the (partial) last grid block: zero the rows that were read
            # past the end of the row array (OOB garbage).
            row = jax.lax.broadcasted_iota(jnp.int32, loss.shape, 0) + row0
            loss = jnp.where(row < rows_last, loss, 0.0)

        # Tile-aligned partial sum: (chunk, 128) -> (chunk/8, 8, 128) -> (8,128)
        return loss.reshape(chunk_rows // 8, 8, 128).sum(axis=0)

    def run(masked):
        o_ref[0] = jnp.zeros((8, 128), jnp.float32)

        @pl.loop(0, nchunks)
        def _(c):
            row0 = pl.multiple_of(c * chunk_rows, 8)
            o_ref[0] += chunk_partial(row0, masked)

    if rows_last == r_tile:           # all blocks are full: no masking anywhere
        run(False)
    else:
        @pl.when(pl.program_id(0) < num_blocks - 1)
        def _():
            run(False)

        @pl.when(pl.program_id(0) == num_blocks - 1)
        def _():
            run(True)


# ---------------------------------------------------------------------------
# Wrapper
# ---------------------------------------------------------------------------
def _round_up(x, m):
    return ((x + m - 1) // m) * m


def giou_loss_pallas(preds, targets, *, eps=1e-6, reduction="mean",
                     loss_weight=1.0, max_tile_rows=4096, chunk_rows=256):
    """Pallas equivalent of GIoULoss().forward(preds, targets) with
    weight=None / avg_factor=None (default 'mean' reduction)."""
    # TODO(synk): only reduction='mean' with weight=None/avg_factor=None is
    # implemented (API parity note).
    assert reduction == "mean", "only the default 'mean' reduction is implemented"
    assert preds.shape == targets.shape and preds.ndim == 2 and preds.shape[1] == 4
    n = preds.shape[0]
    if n == 0:  # matches the `preds.sum() * 0` shortcut in the reference
        return jnp.sum(preds) * 0.0

    # Pad (with zero boxes) only when needed; each zero box contributes
    # exactly 1.0 to the loss sum and is corrected below.
    n_pad = max(256, _round_up(n, 32))
    if n_pad != n:
        preds = jnp.pad(preds, ((0, n_pad - n), (0, 0)))
        targets = jnp.pad(targets, ((0, n_pad - n), (0, 0)))

    # Free row-major view: (n_pad, 4) -> (n_pad/32, 128) interleaved rows.
    total_rows = n_pad // 32
    p_rows = preds.reshape(total_rows, 128)
    t_rows = targets.reshape(total_rows, 128)

    # Tile rows: multiple of 8, capped so >= 2 grid blocks whenever possible
    # (megacore on v7x), and capped by max_tile_rows (VMEM budget).
    target_rows = _round_up(-(-total_rows // 2), 8)
    if target_rows > 256:
        target_rows = _round_up(target_rows, 256)
    r_tile = min(_round_up(max_tile_rows, 8), target_rows)
    num_blocks = -(-total_rows // r_tile)
    rows_last = total_rows - (num_blocks - 1) * r_tile
    chunk = math.gcd(r_tile, max(8, _round_up(chunk_rows, 8)))
    assert r_tile % 8 == 0 and chunk % 8 == 0 and r_tile % chunk == 0

    s1, s2 = _resolve_down_shifts()
    kernel = functools.partial(
        _giou_kernel, eps=float(eps), r_tile=r_tile, chunk_rows=chunk,
        num_blocks=num_blocks, rows_last=rows_last, s1=s1, s2=s2)

    itemsize = int(jnp.dtype(preds.dtype).itemsize)
    cost = pl.CostEstimate(
        flops=int(100 * n_pad),
        transcendentals=int(2 * n_pad),
        bytes_accessed=int(2 * 4 * n_pad * itemsize + num_blocks * 8 * 128 * 4),
    )

    partials = pl.pallas_call(
        kernel,
        out_shape=jax.ShapeDtypeStruct((num_blocks, 8, 128), jnp.float32),
        grid=(num_blocks,),
        in_specs=[
            pl.BlockSpec((r_tile, 128), lambda i: (i, 0)),
            pl.BlockSpec((r_tile, 128), lambda i: (i, 0)),
        ],
        out_specs=pl.BlockSpec((1, 8, 128), lambda i: (i, 0, 0)),
        compiler_params=pltpu.CompilerParams(
            dimension_semantics=("parallel",)),
        cost_estimate=cost,
    )(p_rows, t_rows)

    # Keep only lane offset 0 of each 4-lane group (the per-box loss lanes).
    keep = (jnp.arange(128, dtype=jnp.int32) % 4) == 0
    total = jnp.sum(jnp.where(keep, partials, 0.0))
    # Zero-padded boxes each contributed exactly 1.0.
    total = total - jnp.float32(n_pad - n)
    return loss_weight * (total / jnp.float32(n))


# ---------------------------------------------------------------------------
# Pure-JAX reference (mirrors the PyTorch implementation) and self-test.
# ---------------------------------------------------------------------------
def _giou_loss_ref(preds, targets, eps=1e-6, loss_weight=1.0):
    preds = preds.astype(jnp.float32)
    targets = targets.astype(jnp.float32)
    x1, y1, x2, y2 = [preds[:, i] for i in range(4)]
    x1g, y1g, x2g, y2g = [targets[:, i] for i in range(4)]
    xkis1 = jnp.maximum(x1, x1g); ykis1 = jnp.maximum(y1, y1g)
    xkis2 = jnp.minimum(x2, x2g); ykis2 = jnp.minimum(y2, y2g)
    mask = (ykis2 > ykis1) & (xkis2 > xkis1)
    intsctk = jnp.where(mask, (xkis2 - xkis1) * (ykis2 - ykis1), 0.0)
    unionk = (x2 - x1) * (y2 - y1) + (x2g - x1g) * (y2g - y1g) - intsctk
    iouk = intsctk / (unionk + eps)
    xc1 = jnp.minimum(x1, x1g); yc1 = jnp.minimum(y1, y1g)
    xc2 = jnp.maximum(x2, x2g); yc2 = jnp.maximum(y2, y2g)
    area_c = (xc2 - xc1) * (yc2 - yc1)
    miouk = iouk - (area_c - unionk) / (area_c + eps)
    return loss_weight * jnp.mean(1.0 - miouk)


def _make_boxes(key, n):
    k1, k2 = jax.random.split(key)
    xy = jax.random.uniform(k1, (n, 2), jnp.float32, 0.0, 10.0)
    wh = jax.random.uniform(k2, (n, 2), jnp.float32, 0.5, 5.0)
    return jnp.concatenate([xy, xy + wh], axis=-1)  # valid (x1, y1, x2, y2)


if __name__ == "__main__":
    key = jax.random.PRNGKey(0)
    keys = jax.random.split(key, 6)

    # 1) Module-sized case: n = 8 boxes (heavy zero-pad, single grid block).
    n = 8
    preds = _make_boxes(keys[0], n)
    targets = _make_boxes(keys[1], n)
    loss = giou_loss_pallas(preds, targets)
    jax.block_until_ready(loss)
    ref = _giou_loss_ref(preds, targets)
    assert jnp.allclose(loss, ref, atol=1e-4, rtol=1e-4), (loss, ref)

    # 2) Multiple grid blocks + partial last block + zero-pad correction +
    #    in-tile chunk loop (chunk_rows=8 forces several inner iterations).
    n2 = 2500
    preds2 = _make_boxes(keys[2], n2)
    targets2 = _make_boxes(keys[3], n2)
    loss2 = giou_loss_pallas(preds2, targets2, chunk_rows=8)
    jax.block_until_ready(loss2)
    ref2 = _giou_loss_ref(preds2, targets2)
    assert jnp.allclose(loss2, ref2, atol=1e-4, rtol=1e-4), (loss2, ref2)

    # 3) No-pad fast path (n multiple of 32 / >= 256), exact two-block split.
    n3 = 1024
    preds3 = _make_boxes(keys[4], n3)
    targets3 = _make_boxes(keys[5], n3)
    loss3 = giou_loss_pallas(preds3, targets3)
    jax.block_until_ready(loss3)
    ref3 = _giou_loss_ref(preds3, targets3)
    assert jnp.allclose(loss3, ref3, atol=1e-4, rtol=1e-4), (loss3, ref3)

    print("KERNEL_OK")
</pallas_src>

<mosaic_0001>
module attributes {stable_mosaic.version = 11 : i64} {
  func.func @probe(%arg0: memref<8x128xf32, #tpu.memory_space<vmem>>, %arg1: memref<8x128xf32, #tpu.memory_space<vmem>>) attributes {dimension_semantics = [], scalar_prefetch = 0 : i64, scratch_operands = 0 : i64, tpu.core_type = #tpu.core_type<tc>} {
    %c0 = arith.constant 0 : index
    %c0_0 = arith.constant 0 : index
    %0 = vector.load %arg0[%c0, %c0_0] : memref<8x128xf32, #tpu.memory_space<vmem>>, vector<8x128xf32>
    %c127_i32 = arith.constant 127 : i32
    %1 = tpu.dynamic_rotate %0 by %c127_i32 dim 1 : vector<8x128xf32>, i32 -> vector<8x128xf32>
    %c0_1 = arith.constant 0 : index
    %c0_2 = arith.constant 0 : index
    %2 = vector.load %arg1[%c0_1, %c0_2] : memref<8x128xf32, #tpu.memory_space<vmem>>, vector<8x128xf32>
    tpu.vector_store %arg1[%c0_1, %c0_2], %1 {strides = array<i32>} : memref<8x128xf32, #tpu.memory_space<vmem>>, vector<8x128xf32>,
    return
  }
}

</mosaic_0001>

<bundles_post_ra>
// kernel: tpu_custom_call.1
= control target key start
LH: loop header
LB: loop body
LE: loop exit
PB: predicated region body
PF: predicated region fallthrough
CT: control target
= control target key end

     0   :  { %6 = vsyncpa [#allocation3], 0  ;;  %s128_s0 = inlined_call_operand.hbm [shape: f32[8,128], index: 0, kind: input, shape index: {}]   ;;  %s129_s1 = inlined_call_operand.hbm [shape: f32[8,128], index: 1, kind: output, shape index: {}]  }
   0x1   :  { %7 = vsyncpa [#allocation4], 0  ;;  %s91_s6 = smov [#allocation2]   ;;  %s43_s10 = scalar_lea.hbm %s128_s0, 128 }
   0x2   :  { %s14_s7 = sshll.u32 %s91_s6, 4  ;;  %p44_p0 = scmp.ne.s32.totalorder %s128_s0, %s43_s10  ;;  %s15_s7 = int_to_ptr.vmem [resolvable:$true] %s14_s7 }
   0x3   :  { %p47_p1 = scmp.lt.u32.totalorder %s43_s10, %s128_s0 }
   0x5   :  { %p49_p2 = pnand %p47_p1, %p44_p0 }
   0x7   :  { %52 = shalt.err (!%p49_p2)
}
   0x8   :  { %s53_s15 = scalar_lea.vmem %s15_s7, 128  ;;  %p58_p4 = scmp.lt.s32.totalorder %s15_s7, %s15_s7 }
   0x9   :  { %p54_p3 = scmp.ne.s32.totalorder %s15_s7, %s53_s15  ;;  %p59_p5 = scmp.lt.s32.totalorder %s53_s15, %s53_s15 }
   0xb   :  { %p60_p6 = por %p59_p5, %p58_p4 }
   0xd   :  { %p61_p7 = pnand %p60_p6, %p54_p3 }
   0xf   :  { %64 = shalt.err (!%p61_p7)
}
  0x10   :  { %17 = dma.hbm_to_vmem [thread:$0]  %s128_s0, 128, %s15_s7, [#allocation3]  }
  0x11   :  { %87 = dma.done.wait [#allocation3], 128  }
  0x12   :  { %88 = vsyncadd [#allocation3], 4294967168  ;;  %v21_v0 = vld [vmem:[#allocation2] sm:$0xff]  ;;  %s92_s18 = smov 127   ;;  %s93_s19 = smov [#allocation5]  }
  0x13   :  { %22 = vrot.lane.b32.xlu0 %v21_v0, %s92_s18  ;;  %s31_s20 = sshll.u32 %s93_s19, 4  ;;  %s32_s20 = int_to_ptr.vmem [resolvable:$true] %s31_s20 }
  0x14   :  { %s65_s21 = scalar_lea.vmem %s32_s20, 128  ;;  %p70_p9 = scmp.lt.s32.totalorder %s32_s20, %s32_s20 }
  0x15   :  { %p66_p8 = scmp.ne.s32.totalorder %s32_s20, %s65_s21  ;;  %p71_p10 = scmp.lt.s32.totalorder %s65_s21, %s65_s21 }
  0x17   :  { %p72_p11 = por %p71_p10, %p70_p9 }
  0x19   :  { %p73_p12 = pnand %p72_p11, %p66_p8 }
  0x85   :  { %v23_v1 = vpop.permute.xlu0 %22 }
  0x86   :  { %24 = vst [vmem:[#allocation5] sm:$0xff] %v23_v1 }
  0x87   :  { %76 = shalt.err (!%p73_p12)
}
  0x88   :  { %s77_s0 = scalar_lea.hbm %s129_s1, 128 }
  0x89   :  { %p78_p13 = scmp.ne.s32.totalorder %s129_s1, %s77_s0  ;;  %p81_p0 = scmp.lt.u32.totalorder %s77_s0, %s129_s1 }
  0x8b   :  { %p83_p1 = pnand %p81_p0, %p78_p13 }
  0x8d   :  { %86 = shalt.err (!%p83_p1)
}
  0x8e   :  { %34 = dma.vmem_to_hbm [thread:$0]  %s32_s20, 128, %s129_s1, [#allocation4]  }
  0x8f   :  { %89 = dma.done.wait [#allocation4], 128  }
  0x90   :  { %90 = vsyncadd [#allocation4], 4294967168 }
  0x91   :  { %38 = vsyncpa [#allocation3], 1 }
  0x92   :  { %39 = vsyncpa [#allocation4], 1 }

</bundles_post_ra>
